<compile_context>
chip_gen: v5e
topology: v5e:2x2
jax: 0.10.0
libtpu: 0.0.40
codegen_flags: <defaults>
</compile_context>

<pallas_src>
import functools
import math

import jax
import jax.numpy as jnp
from jax.experimental import pallas as pl
from jax.experimental.pallas import tpu as pltpu

_LANE = 128
_SUBLANE = 8


def _vmem_capacity_bytes():
    try:
        info = pltpu.get_tpu_info()
        cap = getattr(info, "vmem_capacity_bytes", None)
        if cap:
            return int(cap)
    except Exception:
        pass
    return 64 * 1024 * 1024  # conservative: v7x per-TensorCore size


# Per-generation budgets: use at most half of physical VMEM for this kernel's
# scoped allocation (64 MiB on v5e/v6e's 128 MiB, 32 MiB on v7x's 64 MiB), and
# size tiles so that double-buffered (input + all outputs) stays inside it.
_VMEM_CAP = _vmem_capacity_bytes()
_VMEM_LIMIT = min(_VMEM_CAP // 2, 64 * 1024 * 1024)
_TILE_BUDGET = max(1 << 20, (_VMEM_LIMIT - (2 << 20)) // 2)  # one buffer-set


def _normalize_split_sizes(split, dim_size):
    """Reproduce torch.split size semantics."""
    if isinstance(split, int):
        if split <= 0:
            raise ValueError("split size must be positive")
        sizes = [split] * (dim_size // split)
        rem = dim_size % split
        if rem:
            sizes.append(rem)
        return sizes
    sizes = list(split)
    if sum(sizes) != dim_size:
        raise ValueError("split sizes must sum to the dimension size")
    return sizes


# ----------------------------------------------------------------------------
# Kernels
# ----------------------------------------------------------------------------
def _dma_split_kernel(x_ref, *rest, col_bounds, row_bounds):
    """Direct HBM->HBM copies: one strided DMA per (output, row chunk)."""
    n_out = len(col_bounds)
    out_refs = rest[:n_out]
    sem = rest[n_out]
    copies = []
    for j, (c0, cn) in enumerate(col_bounds):
        for r, (r0, rn) in enumerate(row_bounds):
            cp = pltpu.make_async_copy(
                x_ref.at[pl.ds(r0, rn), pl.ds(c0, cn)],
                out_refs[j].at[pl.ds(r0, rn)],
                sem.at[j, r],
            )
            cp.start()
            copies.append(cp)
    for cp in copies:
        cp.wait()


def _vmem_split_kernel(x_ref, *out_refs, col_bounds):
    """Row-tiled VMEM fallback: each output is a static column slice."""
    for o_ref, (c0, cn) in zip(out_refs, col_bounds):
        o_ref[...] = x_ref[:, c0:c0 + cn]


# ----------------------------------------------------------------------------
# Dispatch paths
# ----------------------------------------------------------------------------
def _column_bounds(sizes, inner):
    bounds = []
    off = 0
    for sz in sizes:
        bounds.append((off * inner, sz * inner))
        off += sz
    return bounds


def _aligned_split_call(x2d, sizes, inner, dtype):
    """Single call, direct HBM->HBM DMA per output (lane-aligned widths)."""
    outer, _ = x2d.shape
    itemsize = jnp.dtype(dtype).itemsize
    col_bounds = _column_bounds(sizes, inner)
    n_out = len(sizes)

    # Row chunking: several outstanding DMAs (~8 MiB each) hide descriptor
    # latency; cap total outstanding DMAs at ~32.
    target_chunk_bytes = 8 * 1024 * 1024
    widest_row_bytes = max(cn for _, cn in col_bounds) * itemsize
    want = max(1, (outer * widest_row_bytes) // target_chunk_bytes)
    n_rchunks = int(max(1, min(want, max(1, 32 // n_out), outer)))
    base = -(-outer // n_rchunks)
    base = max(_SUBLANE, ((base + _SUBLANE - 1) // _SUBLANE) * _SUBLANE)
    row_bounds = []
    r0 = 0
    while r0 < outer:
        rn = min(base, outer - r0)
        row_bounds.append((r0, rn))
        r0 += rn

    kernel = functools.partial(
        _dma_split_kernel,
        col_bounds=tuple(col_bounds),
        row_bounds=tuple(row_bounds),
    )
    out_shapes = tuple(
        jax.ShapeDtypeStruct((outer, sz * inner), dtype) for sz in sizes)
    outs = pl.pallas_call(
        kernel,
        in_specs=[pl.BlockSpec(memory_space=pl.ANY)],
        out_specs=tuple(pl.BlockSpec(memory_space=pl.ANY) for _ in sizes),
        out_shape=out_shapes,
        scratch_shapes=[pltpu.SemaphoreType.DMA((n_out, len(row_bounds)))],
    )(x2d)
    return list(outs) if isinstance(outs, (tuple, list)) else [outs]


def _fallback_split_call(x2d, sizes, inner, dtype):
    """Lane-unaligned widths: multi-output row-tiled pipelined VMEM copy."""
    outer, total_cols = x2d.shape
    itemsize = jnp.dtype(dtype).itemsize
    col_bounds = _column_bounds(sizes, inner)

    # VMEM per grid step = input stripe + all output stripes
    #                    = 2 * row_tile * total_cols elements, double buffered.
    bytes_per_row = 2 * total_cols * itemsize
    max_rows = max(1, _TILE_BUDGET // bytes_per_row)
    if max_rows >= outer or outer <= _SUBLANE:
        row_tile = outer
    else:
        row_tile = max(_SUBLANE, (max_rows // _SUBLANE) * _SUBLANE)
    # TODO(synk): extremely wide lane-unaligned splits (8-row stripe > budget)
    # would need a column-blocked grid / wrapper-side lane padding.
    n_row = pl.cdiv(outer, row_tile)

    in_spec = pl.BlockSpec((row_tile, total_cols), lambda r: (r, 0))
    out_specs = tuple(
        pl.BlockSpec((row_tile, sz * inner), lambda r: (r, 0)) for sz in sizes)
    out_shapes = tuple(
        jax.ShapeDtypeStruct((outer, sz * inner), dtype) for sz in sizes)
    kernel = functools.partial(_vmem_split_kernel, col_bounds=tuple(col_bounds))
    outs = pl.pallas_call(
        kernel,
        grid=(n_row,),
        in_specs=[in_spec],
        out_specs=out_specs,
        out_shape=out_shapes,
        compiler_params=pltpu.CompilerParams(
            dimension_semantics=("parallel",),
            vmem_limit_bytes=_VMEM_LIMIT,
        ),
    )(x2d)
    return list(outs) if isinstance(outs, (tuple, list)) else [outs]


# ----------------------------------------------------------------------------
# Public wrapper (== TorchSplit(axis, split).forward)
# ----------------------------------------------------------------------------
def pallas_split(x, split, axis):
    ndim = x.ndim
    ax = axis % ndim
    D = x.shape[ax]
    sizes = _normalize_split_sizes(split, D)

    outer = int(math.prod(x.shape[:ax]))
    inner = int(math.prod(x.shape[ax + 1:]))

    out_shapes_nd = []
    for sz in sizes:
        shp = list(x.shape)
        shp[ax] = sz
        out_shapes_nd.append(tuple(shp))

    # Degenerate / empty tensors: nothing to move.
    if outer == 0 or inner == 0 or D == 0:
        return tuple(jnp.zeros(s, x.dtype) for s in out_shapes_nd)

    # Free contiguous 2D view: each split element owns `inner` columns.
    x2d = x.reshape(outer, D * inner)

    nonzero = [sz for sz in sizes if sz > 0]
    # Fast-path gate (generalized): every output's width (and hence every
    # cumulative start offset) is a multiple of 128 lanes.
    aligned = all((sz * inner) % _LANE == 0 for sz in nonzero)

    outs_nz = []
    if nonzero:
        if aligned:
            try:
                outs_nz = _aligned_split_call(x2d, nonzero, inner, x.dtype)
                jax.block_until_ready(outs_nz)
            except Exception:
                # Defensive: if direct HBM->HBM DMA is rejected by this
                # backend/version, the pipelined VMEM path is still correct
                # (and lane-aligned here, so no masked stores).
                outs_nz = _fallback_split_call(x2d, nonzero, inner, x.dtype)
        else:
            outs_nz = _fallback_split_call(x2d, nonzero, inner, x.dtype)

    outs2d = []
    it = iter(outs_nz)
    for sz in sizes:
        outs2d.append(next(it) if sz > 0 else jnp.zeros((outer, 0), x.dtype))

    return tuple(o.reshape(s) for o, s in zip(outs2d, out_shapes_nd))


if __name__ == "__main__":
    key = jax.random.PRNGKey(0)

    def check(x, split, axis):
        outs = jax.block_until_ready(pallas_split(x, split, axis))
        ax = axis % x.ndim
        sizes = _normalize_split_sizes(split, x.shape[ax])
        assert len(outs) == len(sizes)
        off = 0
        for o, sz in zip(outs, sizes):
            ref = jax.lax.slice_in_dim(x, off, off + sz, axis=ax)
            assert o.shape == ref.shape and o.dtype == ref.dtype
            assert jnp.array_equal(o, ref)
            off += sz

    # 1) Module config: torch.split(x, [1, 3], dim=1)  -> aligned DMA path.
    x = jax.random.normal(key, (2, 4, 16, 16), dtype=jnp.float32)
    check(x, [1, 3], 1)

    # 2) int-split semantics: torch.split(x, 2, dim=1)  -> aligned DMA path.
    check(x, 2, 1)

    # 3) Last-axis lane-aligned split (inner == 1, widths % 128 == 0):
    #    exercises the generalized fast-path gate.
    x3 = jax.random.normal(key, (2, 8, 256), dtype=jnp.float32)
    check(x3, [128, 128], -1)

    # 4) Lane-unaligned last-axis split -> VMEM fallback path.
    check(x, [5, 11], -1)

    # 5) Fallback with small, non-multiple-of-8 outer extent.
    x5 = jax.random.normal(key, (3, 5, 7), dtype=jnp.float32)
    check(x5, [2, 3], 1)

    print("KERNEL_OK")
</pallas_src>

<mosaic_0001>
module attributes {stable_mosaic.version = 11 : i64} {
  func.func @_dma_split_kernel(%arg0: memref<2x1024xf32, #tpu.memory_space<any>>, %arg1: memref<2x256xf32, #tpu.memory_space<any>>, %arg2: memref<2x768xf32, #tpu.memory_space<any>>, %arg3: memref<2x1x!tpu.dma_semaphore, #tpu.memory_space<semaphore_mem>>) attributes {dimension_semantics = [], scalar_prefetch = 0 : i64, scratch_operands = 1 : i64, tpu.core_type = #tpu.core_type<tc>} {
    %c0_i32 = arith.constant 0 : i32
    %c0_i32_0 = arith.constant 0 : i32
    %c0_i32_1 = arith.constant 0 : i32
    %c0_i32_2 = arith.constant 0 : i32
    %0 = tpu.memref_slice %arg0[%c0_i32_1, %c0_i32_2] : memref<2x1024xf32, #tpu.memory_space<any>> -> memref<2x256xf32, #tpu.memory_space<any>>
    %c0_i32_3 = arith.constant 0 : i32
    %c0_i32_4 = arith.constant 0 : i32
    %1 = tpu.memref_slice %arg1[%c0_i32_3, %c0_i32_4] : memref<2x256xf32, #tpu.memory_space<any>> -> memref<2x256xf32, #tpu.memory_space<any>>
    %2 = tpu.memref_slice %arg3[%c0_i32, %c0_i32_0] : memref<2x1x!tpu.dma_semaphore, #tpu.memory_space<semaphore_mem>> -> memref<1x1x!tpu.dma_semaphore, #tpu.memory_space<semaphore_mem>>
    %3 = tpu.memref_squeeze %2 : memref<1x1x!tpu.dma_semaphore, #tpu.memory_space<semaphore_mem>> -> memref<!tpu.dma_semaphore, #tpu.memory_space<semaphore_mem>>
    tpu.enqueue_dma source(%0 : memref<2x256xf32, #tpu.memory_space<any>>) target(%1 : memref<2x256xf32, #tpu.memory_space<any>>) target_semaphore(%3 : memref<!tpu.dma_semaphore, #tpu.memory_space<semaphore_mem>>)
    %c1_i32 = arith.constant 1 : i32
    %c0_i32_5 = arith.constant 0 : i32
    %c0_i32_6 = arith.constant 0 : i32
    %c256_i32 = arith.constant 256 : i32
    %4 = tpu.memref_slice %arg0[%c0_i32_6, %c256_i32] : memref<2x1024xf32, #tpu.memory_space<any>> -> memref<2x768xf32, #tpu.memory_space<any>>
    %c0_i32_7 = arith.constant 0 : i32
    %c0_i32_8 = arith.constant 0 : i32
    %5 = tpu.memref_slice %arg2[%c0_i32_7, %c0_i32_8] : memref<2x768xf32, #tpu.memory_space<any>> -> memref<2x768xf32, #tpu.memory_space<any>>
    %6 = tpu.memref_slice %arg3[%c1_i32, %c0_i32_5] : memref<2x1x!tpu.dma_semaphore, #tpu.memory_space<semaphore_mem>> -> memref<1x1x!tpu.dma_semaphore, #tpu.memory_space<semaphore_mem>>
    %7 = tpu.memref_squeeze %6 : memref<1x1x!tpu.dma_semaphore, #tpu.memory_space<semaphore_mem>> -> memref<!tpu.dma_semaphore, #tpu.memory_space<semaphore_mem>>
    tpu.enqueue_dma source(%4 : memref<2x768xf32, #tpu.memory_space<any>>) target(%5 : memref<2x768xf32, #tpu.memory_space<any>>) target_semaphore(%7 : memref<!tpu.dma_semaphore, #tpu.memory_space<semaphore_mem>>)
    %c0_i32_9 = arith.constant 0 : i32
    %c0_i32_10 = arith.constant 0 : i32
    %c0_i32_11 = arith.constant 0 : i32
    %c0_i32_12 = arith.constant 0 : i32
    %8 = tpu.memref_slice %arg0[%c0_i32_11, %c0_i32_12] : memref<2x1024xf32, #tpu.memory_space<any>> -> memref<2x256xf32, #tpu.memory_space<any>>
    %c0_i32_13 = arith.constant 0 : i32
    %c0_i32_14 = arith.constant 0 : i32
    %9 = tpu.memref_slice %arg1[%c0_i32_13, %c0_i32_14] : memref<2x256xf32, #tpu.memory_space<any>> -> memref<2x256xf32, #tpu.memory_space<any>>
    %10 = tpu.memref_slice %arg3[%c0_i32_9, %c0_i32_10] : memref<2x1x!tpu.dma_semaphore, #tpu.memory_space<semaphore_mem>> -> memref<1x1x!tpu.dma_semaphore, #tpu.memory_space<semaphore_mem>>
    %11 = tpu.memref_squeeze %10 : memref<1x1x!tpu.dma_semaphore, #tpu.memory_space<semaphore_mem>> -> memref<!tpu.dma_semaphore, #tpu.memory_space<semaphore_mem>>
    tpu.wait_dma2 semaphore(%11 : memref<!tpu.dma_semaphore, #tpu.memory_space<semaphore_mem>>) src(%8 : memref<2x256xf32, #tpu.memory_space<any>>) dst(%9 : memref<2x256xf32, #tpu.memory_space<any>>)
    %c1_i32_15 = arith.constant 1 : i32
    %c0_i32_16 = arith.constant 0 : i32
    %c0_i32_17 = arith.constant 0 : i32
    %c256_i32_18 = arith.constant 256 : i32
    %12 = tpu.memref_slice %arg0[%c0_i32_17, %c256_i32_18] : memref<2x1024xf32, #tpu.memory_space<any>> -> memref<2x768xf32, #tpu.memory_space<any>>
    %c0_i32_19 = arith.constant 0 : i32
    %c0_i32_20 = arith.constant 0 : i32
    %13 = tpu.memref_slice %arg2[%c0_i32_19, %c0_i32_20] : memref<2x768xf32, #tpu.memory_space<any>> -> memref<2x768xf32, #tpu.memory_space<any>>
    %14 = tpu.memref_slice %arg3[%c1_i32_15, %c0_i32_16] : memref<2x1x!tpu.dma_semaphore, #tpu.memory_space<semaphore_mem>> -> memref<1x1x!tpu.dma_semaphore, #tpu.memory_space<semaphore_mem>>
    %15 = tpu.memref_squeeze %14 : memref<1x1x!tpu.dma_semaphore, #tpu.memory_space<semaphore_mem>> -> memref<!tpu.dma_semaphore, #tpu.memory_space<semaphore_mem>>
    tpu.wait_dma2 semaphore(%15 : memref<!tpu.dma_semaphore, #tpu.memory_space<semaphore_mem>>) src(%12 : memref<2x768xf32, #tpu.memory_space<any>>) dst(%13 : memref<2x768xf32, #tpu.memory_space<any>>)
    return
  }
}

module attributes {stable_mosaic.version = 11 : i64} {
  func.func @_vmem_split_kernel(%arg0: i32, %arg1: memref<2x1024xf32, #tpu.memory_space<vmem>>, %arg2: memref<2x256xf32, #tpu.memory_space<vmem>>, %arg3: memref<2x768xf32, #tpu.memory_space<vmem>>) attributes {dimension_semantics = [#tpu.dimension_semantics<parallel>], iteration_bounds = array<i64: 1>, scalar_prefetch = 0 : i64, scratch_operands = 0 : i64, tpu.core_type = #tpu.core_type<tc>, window_params = [{transform_indices = @transform_0, window_bounds = array<i64: 2, 1024>}, {transform_indices = @transform_1, window_bounds = array<i64: 2, 256>}, {transform_indices = @transform_2, window_bounds = array<i64: 2, 768>}]} {
    %c0 = arith.constant 0 : index
    %c0_0 = arith.constant 0 : index
    %0 = vector.load %arg1[%c0, %c0_0] : memref<2x1024xf32, #tpu.memory_space<vmem>>, vector<2x256xf32>
    %c0_1 = arith.constant 0 : index
    %c0_2 = arith.constant 0 : index
    %1 = vector.load %arg2[%c0_1, %c0_2] : memref<2x256xf32, #tpu.memory_space<vmem>>, vector<2x256xf32>
    tpu.vector_store %arg2[%c0_1, %c0_2], %0 {strides = array<i32>} : memref<2x256xf32, #tpu.memory_space<vmem>>, vector<2x256xf32>,
    %c0_3 = arith.constant 0 : index
    %c256 = arith.constant 256 : index
    %2 = vector.load %arg1[%c0_3, %c256] : memref<2x1024xf32, #tpu.memory_space<vmem>>, vector<2x768xf32>
    %c0_4 = arith.constant 0 : index
    %c0_5 = arith.constant 0 : index
    %3 = vector.load %arg3[%c0_4, %c0_5] : memref<2x768xf32, #tpu.memory_space<vmem>>, vector<2x768xf32>
    tpu.vector_store %arg3[%c0_4, %c0_5], %2 {strides = array<i32>} : memref<2x768xf32, #tpu.memory_space<vmem>>, vector<2x768xf32>,
    return
  }
  func.func @transform_0(%arg0: i32) -> (i32, i32) {
    %c0_i32 = arith.constant 0 : i32
    %c0_i32_0 = arith.constant 0 : i32
    return %arg0, %c0_i32 : i32, i32
  }
  func.func @transform_1(%arg0: i32) -> (i32, i32) {
    %c0_i32 = arith.constant 0 : i32
    %c0_i32_0 = arith.constant 0 : i32
    return %arg0, %c0_i32 : i32, i32
  }
  func.func @transform_2(%arg0: i32) -> (i32, i32) {
    %c0_i32 = arith.constant 0 : i32
    %c0_i32_0 = arith.constant 0 : i32
    return %arg0, %c0_i32 : i32, i32
  }
}

</mosaic_0001>

<bundles_post_ra>
// kernel: tpu_custom_call.1
= control target key start
LH: loop header
LB: loop body
LE: loop exit
PB: predicated region body
PF: predicated region fallthrough
CT: control target
= control target key end

     0   :  { %s63_s18 = smov [#allocation2]   ;;  %s64_s19 = smov [#allocation3]   ;;  %s95_s0 = inlined_call_operand.hbm [shape: f32[2,1024], index: 0, kind: input, shape index: {}]   ;;  %s96_s1 = inlined_call_operand.hbm [shape: f32[2,256], index: 1, kind: output, shape index: {0}]   ;;  %s97_s2 = inlined_call_operand.hbm [shape: f32[2,768], index: 2, kind: output, shape index: {1}]  }
   0x1   :  { %s12_s11 = sshll.u32 %s95_s0, 4  ;;  %s14_s14 = sshll.u32 %s96_s1, 4  ;;  %s13_s11 = int_to_ptr.hbm [resolvable:$true] %s12_s11  ;;  %s15_s14 = int_to_ptr.hbm [resolvable:$true] %s14_s14 }
   0x2   :  { %s19_s17 = scalar_lea.hbm %s95_s0, 4  ;;  %s65_s20 = smov 0  }
   0x3   :  { %18 = dma.general %s13_s11, 64, %s15_s14, %s63_s18, %s64_s19, [#allocation4], %s65_s20, 0  }
   0x4   :  { %s25_s21 = sshll.u32 %s19_s17, 4  ;;  %s27_s24 = sshll.u32 %s97_s2, 4  ;;  %s26_s21 = int_to_ptr.hbm [resolvable:$true] %s25_s21  ;;  %s28_s24 = int_to_ptr.hbm [resolvable:$true] %s27_s24 }
   0x5   :  { %s66_s25 = smov [#allocation2 + $0x1]   ;;  %s67_s26 = smov [#allocation5]  }
   0x6   :  { %31 = dma.general %s26_s21, 192, %s28_s24, %s66_s25, %s67_s26, [#allocation6], %s65_s20, 0  }
   0x7   :  { %59 = dma.done.wait [#allocation2], 64 }
   0x8   :  { %60 = vsyncadd [#allocation2], 4294967232 }
   0x9   :  { %61 = dma.done.wait [#allocation2 + $0x1], 192 }
   0xa   :  { %62 = vsyncadd [#allocation2 + $0x1], 4294967104 }
   0xb   :  { %39 = vsyncmov [#allocation2] }
   0xe   :  { %s40_s0 = vpop.sfrf %39 }
   0xf   :  { %p52_p0 = scmp.ne.s32.totalorder %s40_s0, 0 }
  0x11   :  { %44 = shalt.err (%p52_p0)  }
  0x12   :  { %46 = vsyncmov [#allocation2 + $0x1] }
  0x15   :  { %s47_s1 = vpop.sfrf %46 }
  0x16   :  { %p53_p1 = scmp.ne.s32.totalorder %s47_s1, 0 }
  0x18   :  { %51 = shalt.err (%p53_p1)  }

// kernel: tpu_custom_call.1
= control target key start
LH: loop header
LB: loop body
LE: loop exit
PB: predicated region body
PF: predicated region fallthrough
CT: control target
= control target key end

     0   :  { %8 = vsyncpa [#allocation3], 0  ;;  %s173_s0 = inlined_call_operand.hbm [shape: f32[2,1024], index: 0, kind: input, shape index: {}]   ;;  %s174_s1 = inlined_call_operand.hbm [shape: f32[2,256], index: 1, kind: output, shape index: {0}]   ;;  %s175_s2 = inlined_call_operand.hbm [shape: f32[2,768], index: 2, kind: output, shape index: {1}]  }
   0x1   :  { %9 = vsyncpa [#allocation4], 0 }
   0x2   :  { %10 = vsyncpa [#allocation7], 0  ;;  %s16_s11 = sshll.u32 %s173_s0, 4  ;;  %s146_s12 = smov [#allocation2]   ;;  %s17_s11 = int_to_ptr.hbm [resolvable:$true] %s16_s11 }
   0x3   :  { %s18_s13 = sshll.u32 %s146_s12, 4  ;;  %s19_s13 = int_to_ptr.vmem [resolvable:$true] %s18_s13 }
   0x4   :  { %21 = dma.hbm_to_vmem [thread:$0]  %s17_s11, 256, %s19_s13, [#allocation3]  }
   0x5   :  { %140 = dma.done.wait [#allocation3], 256  }
   0x6   :  { %141 = vsyncadd [#allocation3], 4294967040  ;;  %s147_s14 = smov [#allocation5]   ;;  %s39_s18 = sshll.u32 %s174_s1, 4  ;;  %v26_v0 = vld [vmem:[#allocation2] sm:$0xf]  ;;  %s40_s18 = int_to_ptr.hbm [resolvable:$true] %s39_s18 }
   0x7   :  { %s37_s15 = sshll.u32 %s147_s14, 4  ;;  %s148_s19 = smov [#allocation6]   ;;  %v28_v1 = vld [vmem:[#allocation2 + $0x4] sm:$0xff]  ;;  %v29_v2 = vld [vmem:[#allocation2 + $0xc] sm:$0xf]  ;;  %s38_s15 = int_to_ptr.vmem [resolvable:$true] %s37_s15 }
   0x8   :  { %s48_s20 = sshll.u32 %s148_s19, 4  ;;  %s50_s23 = sshll.u32 %s175_s2, 4  ;;  %27 = vst [vmem:[#allocation5] sm:$0xf] %v26_v0  ;;  %s49_s20 = int_to_ptr.vmem [resolvable:$true] %s48_s20  ;;  %s51_s23 = int_to_ptr.hbm [resolvable:$true] %s50_s23 }
   0x9   :  { %30 = vst [vmem:[#allocation6] sm:$0xff] %v28_v1  ;;  %42 = dma.vmem_to_hbm [thread:$0]  %s38_s15, 64, %s40_s18, [#allocation4]  }
   0xa   :  { %31 = vst [vmem:[#allocation6 + $0x8] sm:$0xf] %v29_v2 }
   0xb   :  { %53 = dma.vmem_to_hbm [thread:$0]  %s49_s20, 192, %s51_s23, [#allocation7]  }
   0xc   :  { %142 = dma.done.wait [#allocation4], 64  }
   0xd   :  { %143 = vsyncadd [#allocation4], 4294967232 }
   0xe   :  { %144 = dma.done.wait [#allocation7], 192  }
   0xf   :  { %145 = vsyncadd [#allocation7], 4294967104 }
  0x10   :  { %62 = vsyncpa [#allocation3], 1 }
  0x11   :  { %63 = vsyncpa [#allocation4], 1 }
  0x12   :  { %64 = vsyncpa [#allocation7], 1 }

</bundles_post_ra>
